<compile_context>
chip_gen: v7x
topology: tpu7x:2x2x1
jax: 0.10.0
libtpu: 0.0.40
codegen_flags: <defaults>
</compile_context>

<pallas_src>
import jax
import jax.numpy as jnp
from jax.experimental import pallas as pl
from jax.experimental.pallas import tpu as pltpu

_LANES = 128


def _round_up(v, m):
  return (v + m - 1) // m * m


def _fold_bn(w, b, bn, eps=1e-5):
  """Fold eval-mode BatchNorm1d into the preceding linear/conv weights."""
  gamma, beta, rmean, rvar = bn
  s = gamma / jnp.sqrt(rvar + eps)
  t = beta - rmean * s
  return w * s[None, :], b * s + t


def _pack_params(p):
  """Fold BN, then pack every weight/bias into one [R, 128] f32 slab.

  Returns (slab, weight_blocks, bias_cols); the layout metadata are Python
  ints (static), so the kernel can slice the slab with zero-cost views.
  """
  w1, b1 = _fold_bn(p["w1"], p["b1"], p["bn1"])
  w2, b2 = _fold_bn(p["w2"], p["b2"], p["bn2"])
  weights = [w1, w2, p["wlin"], p["wil"], p["whl1"], p["whl2"], p["wol"]]
  biases = [b1, b2, p["blin"], p["bil"], p["bhl1"], p["bhl2"], p["bol"]]

  row = 8  # rows 0..7 hold the seven bias vectors (row i = bias i)
  wblocks = []
  for w in weights:
    r, c = int(w.shape[0]), int(w.shape[1])
    wblocks.append((row, r, c))
    row += _round_up(r, 8)          # keep every block 8-sublane aligned

  slab = jnp.zeros((row, _LANES), jnp.float32)
  for i, b in enumerate(biases):
    slab = slab.at[i, : b.shape[0]].set(b.astype(jnp.float32))
  for (off, r, c), w in zip(wblocks, weights):
    slab = slab.at[off: off + r, :c].set(w.astype(jnp.float32))
  bias_cols = [int(b.shape[0]) for b in biases]
  return slab, wblocks, bias_cols


def _vmem_ceiling_bytes():
  """Per-chip usable VMEM budget: physical capacity minus compiler headroom."""
  try:
    phys = int(pltpu.get_tpu_info().vmem_capacity_bytes)
  except Exception:  # pragma: no cover - conservative fallback (v7x sized)
    phys = 64 * 1024 * 1024
  return max(phys - 16 * 1024 * 1024, 32 * 1024 * 1024)


def gcn_forward(x, edge_index, edge_attr, batch, num_graphs, raw_params,
                approx_sigmoid=True):
  """Fused GCN forward. raw_params: dict from make_params (unfolded).

  Set approx_sigmoid=False for a full-precision reciprocal if outputs must
  match the PyTorch reference within tight tolerances.
  """
  x = x.astype(jnp.float32)
  N, F = x.shape

  # ---- Dense adjacency with self-loops (PyG add_remaining_self_loops) ------
  # A[dst, src] = edge_weight for non-self-loop edges; diagonal keeps an
  # existing self-loop's weight, otherwise 1.0.  Normalization (D^-1/2 A
  # D^-1/2) is applied INSIDE the kernel via the dinv vector, so no f32 NxN
  # normalized intermediate is materialized on the host.
  # NOTE: duplicate self-loop edges keep only the last duplicate's weight
  # (minor mismatch vs. a summing scatter on multigraph inputs).
  src, dst = edge_index[0], edge_index[1]
  w = edge_attr.astype(jnp.float32)
  is_loop = src == dst
  a = jnp.zeros((N, N), jnp.float32).at[dst, src].add(
      jnp.where(is_loop, 0.0, w))
  loop_nodes = jnp.where(is_loop, src, N)           # OOB index -> dropped
  diag = jnp.ones((N,), jnp.float32).at[loop_nodes].set(w, mode="drop")
  idx = jnp.arange(N)
  a = a.at[idx, idx].add(diag)                      # diagonal was zero
  deg = jnp.sum(a, axis=1)
  dinv = jnp.where(deg > 0.0, 1.0 / jnp.sqrt(deg), 0.0).reshape(N, 1)
  a_bf16 = a.astype(jnp.bfloat16)                   # MXU-native, half the bytes
  # TODO(synk): for large / static graphs, build and cache A (or a CSR form)
  # once outside the per-call path; this XLA scatter allocates O(N^2).

  # ---- Dense global-mean-pool matrix [G, N] --------------------------------
  # (a graph id with zero nodes yields a zero pooled row; counts clamped to 1)
  onehot = (batch[None, :] == jnp.arange(num_graphs)[:, None]).astype(
      jnp.float32)
  counts = jnp.sum(onehot, axis=1, keepdims=True)
  pool = onehot / jnp.maximum(counts, 1.0)

  # ---- Fold BN + pack all params into one VMEM slab ------------------------
  slab, wblocks, bias_cols = _pack_params(raw_params)
  H = wblocks[2][2]                                  # hidden_channels (static)

  def kernel(x_ref, a_ref, dinv_ref, pool_ref, p_ref, out_ref):
    f32 = jnp.float32
    bf16 = jnp.bfloat16

    def W(i):
      off, r, c = wblocks[i]
      return p_ref[off: off + r, 0:c]

    def B(i):
      return p_ref[i: i + 1, 0: bias_cols[i]]

    def mm(u, v):
      # bf16 MXU operands (1 pass instead of 3-6 for f32xf32), f32 accumulate.
      return jnp.dot(u.astype(bf16), v.astype(bf16),
                     preferred_element_type=f32)

    def sigmoid(v):
      # exp + reciprocal: both land in the EUP slot instead of a VPU divide.
      return pl.reciprocal(1.0 + jnp.exp(-v), approx=approx_sigmoid)

    xv = x_ref[...]          # [N, F]  f32
    av = a_ref[...]          # [N, N]  bf16 (raw A + self-loops, unnormalized)
    dv = dinv_ref[...]       # [N, 1]  f32  (D^-1/2)
    pv = pool_ref[...]       # [G, N]  f32

    def gcn_conv(h, i):
      # A_hat @ (h @ W) + b  ==  dinv * (A @ (dinv * (h @ W))) + b
      y = mm(h, W(i)) * dv                 # [N, H] f32, row-scaled
      return mm(av, y) * dv + B(i)         # f32 epilogue (v5e-friendly)

    # conv1 (+ folded bn1) -> sigmoid       (dropout = identity, eval mode)
    x1 = sigmoid(gcn_conv(xv, 0))
    # conv2 (+ folded bn2) -> relu
    x2 = jnp.maximum(gcn_conv(x1, 1), 0.0)

    # lin over cat([x1, x2], -1) -> relu, as a split-weight sum of two
    # [N,H]@[H,H] matmuls (no lane-offset concatenate / VMEM copy).
    off2, _, c2 = wblocks[2]
    wl_a = p_ref[off2: off2 + H, 0:c2]
    wl_b = p_ref[off2 + H: off2 + 2 * H, 0:c2]
    xl = jnp.maximum(mm(x1, wl_a) + mm(x2, wl_b) + B(2), 0.0)

    # global mean pool [G,N]@[N,H] then MLP head (all f32 epilogues)
    g = mm(pv, xl)
    o = sigmoid(mm(g, W(3)) + B(3))
    o = jnp.maximum(mm(o, W(4)) + B(4), 0.0)
    h = mm(o, W(5)) + B(5)
    o = jnp.where(h > 0.0, h, jnp.exp(h) - 1.0)     # ELU(alpha=1)
    out_ref[...] = mm(o, W(6)) + B(6)

  # ---- VMEM budget: real footprint, no double-buffer factor, per-chip cap --
  G = int(num_graphs)
  footprint = (a_bf16.size * a_bf16.dtype.itemsize
               + x.size * 4 + dinv.size * 4 + pool.size * 4
               + slab.size * 4 + G * 4)
  work = 4 * N * (F + 6 * H) + 4 * G * (H + 64 + 32 + 1)  # f32 activations
  need = int(1.2 * footprint) + work + 4 * 1024 * 1024
  vmem_bytes = int(min(_vmem_ceiling_bytes(), max(32 * 1024 * 1024, need)))

  # ---- Advisory cost estimate for the XLA scheduler -------------------------
  flops = int(
      2 * N * F * H + 2 * N * N * H          # conv1
      + 2 * N * H * H + 2 * N * N * H        # conv2
      + 4 * N * H * H                        # lin (split-weight)
      + 2 * G * N * H                        # global mean pool
      + 2 * G * (H * 64 + 64 * 16 + 16 * 16 + 16)   # MLP head
      + 8 * N * H)                           # dinv scaling / bias / relu
  transcendentals = int(2 * N * H + 2 * G * 64 + G * 16)
  bytes_accessed = int(footprint + G * 4)
  cost = pl.CostEstimate(flops=flops, transcendentals=transcendentals,
                         bytes_accessed=bytes_accessed)

  ins = [x, a_bf16, dinv, pool, slab]
  return pl.pallas_call(
      kernel,
      out_shape=jax.ShapeDtypeStruct((G, 1), jnp.float32),
      in_specs=[pl.BlockSpec(memory_space=pltpu.MemorySpace.VMEM)] * len(ins),
      out_specs=pl.BlockSpec(memory_space=pltpu.MemorySpace.VMEM),
      compiler_params=pltpu.CompilerParams(vmem_limit_bytes=vmem_bytes),
      cost_estimate=cost,
  )(*ins)


def make_params(key, num_node_features, hidden_channels):
  """Deterministic synthetic parameters matching GCN.__init__ shapes (raw)."""
  F, H = num_node_features, hidden_channels
  keys = iter(jax.random.split(key, 40))

  def lin(kin, kout):
    w = jax.random.normal(next(keys), (kin, kout), jnp.float32) / jnp.sqrt(kin)
    b = jax.random.normal(next(keys), (kout,), jnp.float32) * 0.05
    return w, b

  def bn(c):
    gamma = jax.random.uniform(next(keys), (c,), jnp.float32, 0.5, 1.5)
    beta = jax.random.normal(next(keys), (c,), jnp.float32) * 0.1
    rmean = jax.random.normal(next(keys), (c,), jnp.float32) * 0.1
    rvar = jax.random.uniform(next(keys), (c,), jnp.float32, 0.5, 1.5)
    return gamma, beta, rmean, rvar

  p = {}
  p["w1"], p["b1"] = lin(F, H)          # conv1
  p["bn1"] = bn(H)
  p["w2"], p["b2"] = lin(H, H)          # conv2
  p["bn2"] = bn(H)
  p["wlin"], p["blin"] = lin(2 * H, H)  # self.lin
  p["wil"], p["bil"] = lin(H, 64)
  p["whl1"], p["bhl1"] = lin(64, 16)
  p["whl2"], p["bhl2"] = lin(16, 16)
  p["wol"], p["bol"] = lin(16, 1)
  return p


if __name__ == "__main__":
  key = jax.random.PRNGKey(0)
  k_x, k_ei, k_ea, k_p = jax.random.split(key, 4)

  num_node_features = 4
  hidden_channels = 32
  num_nodes = 16
  num_edges = 40
  num_graphs = 2

  # Node features [N, F]
  x = jax.random.normal(k_x, (num_nodes, num_node_features), jnp.float32)

  # Random directed edges (kept within each graph), positive edge weights
  half = num_nodes // 2
  e_half = num_edges // 2
  k_ei0, k_ei1 = jax.random.split(k_ei)
  ei0 = jax.random.randint(k_ei0, (2, e_half), 0, half)
  ei1 = jax.random.randint(k_ei1, (2, e_half), half, num_nodes)
  edge_index = jnp.concatenate([ei0, ei1], axis=1)              # [2, E]
  edge_attr = jax.random.uniform(k_ea, (num_edges,), jnp.float32, 0.5, 1.5)

  # batch vector: first half -> graph 0, second half -> graph 1
  batch = jnp.concatenate([jnp.zeros((half,), jnp.int32),
                           jnp.ones((num_nodes - half,), jnp.int32)])

  params = make_params(k_p, num_node_features, hidden_channels)

  out = gcn_forward(x, edge_index, edge_attr, batch, num_graphs, params)
  out = jax.block_until_ready(out)
  assert out.shape == (num_graphs, 1) and out.dtype == jnp.float32
  assert bool(jnp.all(jnp.isfinite(out)))
  print("KERNEL_OK")
</pallas_src>

<mosaic_0001>
module attributes {stable_mosaic.version = 11 : i64} {
  func.func @kernel(%arg0: memref<16x4xf32, #tpu.memory_space<vmem>>, %arg1: memref<16x16xbf16, #tpu.memory_space<vmem>>, %arg2: memref<16x1xf32, #tpu.memory_space<vmem>>, %arg3: memref<2x16xf32, #tpu.memory_space<vmem>>, %arg4: memref<240x128xf32, #tpu.memory_space<vmem>>, %arg5: memref<2x1xf32, #tpu.memory_space<vmem>>) attributes {dimension_semantics = [], scalar_prefetch = 0 : i64, scratch_operands = 0 : i64, tpu.core_type = #tpu.core_type<tc>} {
    %c0 = arith.constant 0 : index
    %c0_0 = arith.constant 0 : index
    %0 = vector.load %arg0[%c0, %c0_0] : memref<16x4xf32, #tpu.memory_space<vmem>>, vector<16x4xf32>
    %c0_1 = arith.constant 0 : index
    %c0_2 = arith.constant 0 : index
    %1 = vector.load %arg1[%c0_1, %c0_2] : memref<16x16xbf16, #tpu.memory_space<vmem>>, vector<16x16xbf16>
    %c0_3 = arith.constant 0 : index
    %c0_4 = arith.constant 0 : index
    %2 = vector.load %arg2[%c0_3, %c0_4] : memref<16x1xf32, #tpu.memory_space<vmem>>, vector<16x1xf32>
    %c0_5 = arith.constant 0 : index
    %c0_6 = arith.constant 0 : index
    %3 = vector.load %arg3[%c0_5, %c0_6] : memref<2x16xf32, #tpu.memory_space<vmem>>, vector<2x16xf32>
    %c8 = arith.constant 8 : index
    %c0_7 = arith.constant 0 : index
    %4 = vector.load %arg4[%c8, %c0_7] : memref<240x128xf32, #tpu.memory_space<vmem>>, vector<4x32xf32>
    %5 = arith.truncf %0 : vector<16x4xf32> to vector<16x4xbf16>
    %6 = arith.truncf %4 : vector<4x32xf32> to vector<4x32xbf16>
    %cst = arith.constant dense<0.000000e+00> : vector<16x32xf32>
    %7 = tpu.matmul %5, %6, %cst {dimension_numbers = #tpu.dot_dimension_numbers<[1], [0], [0], [1], [0, 0, 1, 1], [], []>} : vector<16x4xbf16>, vector<4x32xbf16>, vector<16x32xf32> -> vector<16x32xf32>
    %8 = vector.broadcast %2 : vector<16x1xf32> to vector<16x32xf32>
    %9 = arith.mulf %7, %8 : vector<16x32xf32>
    %10 = arith.truncf %9 : vector<16x32xf32> to vector<16x32xbf16>
    %cst_8 = arith.constant dense<0.000000e+00> : vector<16x32xf32>
    %11 = tpu.matmul %1, %10, %cst_8 {dimension_numbers = #tpu.dot_dimension_numbers<[1], [0], [0], [1], [0, 0, 1, 1], [], []>} : vector<16x16xbf16>, vector<16x32xbf16>, vector<16x32xf32> -> vector<16x32xf32>
    %12 = vector.broadcast %2 : vector<16x1xf32> to vector<16x32xf32>
    %13 = arith.mulf %11, %12 : vector<16x32xf32>
    %c0_9 = arith.constant 0 : index
    %c0_10 = arith.constant 0 : index
    %14 = vector.load %arg4[%c0_9, %c0_10] : memref<240x128xf32, #tpu.memory_space<vmem>>, vector<1x32xf32>
    %15 = vector.broadcast %14 : vector<1x32xf32> to vector<16x32xf32>
    %16 = arith.addf %13, %15 : vector<16x32xf32>
    %cst_11 = arith.constant 0.000000e+00 : f32
    %17 = vector.broadcast %cst_11 : f32 to vector<16x32xf32>
    %18 = arith.subf %17, %16 : vector<16x32xf32>
    %19 = math.exp %18 : vector<16x32xf32>
    %cst_12 = arith.constant 1.000000e+00 : f32
    %20 = vector.broadcast %cst_12 : f32 to vector<16x32xf32>
    %21 = arith.addf %20, %19 : vector<16x32xf32>
    %22 = tpu.reciprocal %21 {approx = true} : vector<16x32xf32> -> vector<16x32xf32>
    %c16 = arith.constant 16 : index
    %c0_13 = arith.constant 0 : index
    %23 = vector.load %arg4[%c16, %c0_13] : memref<240x128xf32, #tpu.memory_space<vmem>>, vector<32x32xf32>
    %24 = arith.truncf %22 : vector<16x32xf32> to vector<16x32xbf16>
    %25 = arith.truncf %23 : vector<32x32xf32> to vector<32x32xbf16>
    %cst_14 = arith.constant dense<0.000000e+00> : vector<16x32xf32>
    %26 = tpu.matmul %24, %25, %cst_14 {dimension_numbers = #tpu.dot_dimension_numbers<[1], [0], [0], [1], [0, 0, 1, 1], [], []>} : vector<16x32xbf16>, vector<32x32xbf16>, vector<16x32xf32> -> vector<16x32xf32>
    %27 = vector.broadcast %2 : vector<16x1xf32> to vector<16x32xf32>
    %28 = arith.mulf %26, %27 : vector<16x32xf32>
    %29 = arith.truncf %28 : vector<16x32xf32> to vector<16x32xbf16>
    %cst_15 = arith.constant dense<0.000000e+00> : vector<16x32xf32>
    %30 = tpu.matmul %1, %29, %cst_15 {dimension_numbers = #tpu.dot_dimension_numbers<[1], [0], [0], [1], [0, 0, 1, 1], [], []>} : vector<16x16xbf16>, vector<16x32xbf16>, vector<16x32xf32> -> vector<16x32xf32>
    %31 = vector.broadcast %2 : vector<16x1xf32> to vector<16x32xf32>
    %32 = arith.mulf %30, %31 : vector<16x32xf32>
    %c1 = arith.constant 1 : index
    %c0_16 = arith.constant 0 : index
    %33 = vector.load %arg4[%c1, %c0_16] : memref<240x128xf32, #tpu.memory_space<vmem>>, vector<1x32xf32>
    %34 = vector.broadcast %33 : vector<1x32xf32> to vector<16x32xf32>
    %35 = arith.addf %32, %34 : vector<16x32xf32>
    %cst_17 = arith.constant 0.000000e+00 : f32
    %36 = vector.broadcast %cst_17 : f32 to vector<16x32xf32>
    %37 = arith.maximumf %35, %36 : vector<16x32xf32>
    %c48 = arith.constant 48 : index
    %c0_18 = arith.constant 0 : index
    %38 = vector.load %arg4[%c48, %c0_18] : memref<240x128xf32, #tpu.memory_space<vmem>>, vector<32x32xf32>
    %c80 = arith.constant 80 : index
    %c0_19 = arith.constant 0 : index
    %39 = vector.load %arg4[%c80, %c0_19] : memref<240x128xf32, #tpu.memory_space<vmem>>, vector<32x32xf32>
    %40 = arith.truncf %22 : vector<16x32xf32> to vector<16x32xbf16>
    %41 = arith.truncf %38 : vector<32x32xf32> to vector<32x32xbf16>
    %cst_20 = arith.constant dense<0.000000e+00> : vector<16x32xf32>
    %42 = tpu.matmul %40, %41, %cst_20 {dimension_numbers = #tpu.dot_dimension_numbers<[1], [0], [0], [1], [0, 0, 1, 1], [], []>} : vector<16x32xbf16>, vector<32x32xbf16>, vector<16x32xf32> -> vector<16x32xf32>
    %43 = arith.truncf %37 : vector<16x32xf32> to vector<16x32xbf16>
    %44 = arith.truncf %39 : vector<32x32xf32> to vector<32x32xbf16>
    %cst_21 = arith.constant dense<0.000000e+00> : vector<16x32xf32>
    %45 = tpu.matmul %43, %44, %cst_21 {dimension_numbers = #tpu.dot_dimension_numbers<[1], [0], [0], [1], [0, 0, 1, 1], [], []>} : vector<16x32xbf16>, vector<32x32xbf16>, vector<16x32xf32> -> vector<16x32xf32>
    %46 = arith.addf %42, %45 : vector<16x32xf32>
    %c2 = arith.constant 2 : index
    %c0_22 = arith.constant 0 : index
    %47 = vector.load %arg4[%c2, %c0_22] : memref<240x128xf32, #tpu.memory_space<vmem>>, vector<1x32xf32>
    %48 = vector.broadcast %47 : vector<1x32xf32> to vector<16x32xf32>
    %49 = arith.addf %46, %48 : vector<16x32xf32>
    %cst_23 = arith.constant 0.000000e+00 : f32
    %50 = vector.broadcast %cst_23 : f32 to vector<16x32xf32>
    %51 = arith.maximumf %49, %50 : vector<16x32xf32>
    %52 = arith.truncf %3 : vector<2x16xf32> to vector<2x16xbf16>
    %53 = arith.truncf %51 : vector<16x32xf32> to vector<16x32xbf16>
    %cst_24 = arith.constant dense<0.000000e+00> : vector<2x32xf32>
    %54 = tpu.matmul %52, %53, %cst_24 {dimension_numbers = #tpu.dot_dimension_numbers<[1], [0], [0], [1], [0, 0, 1, 1], [], []>} : vector<2x16xbf16>, vector<16x32xbf16>, vector<2x32xf32> -> vector<2x32xf32>
    %c112 = arith.constant 112 : index
    %c0_25 = arith.constant 0 : index
    %55 = vector.load %arg4[%c112, %c0_25] : memref<240x128xf32, #tpu.memory_space<vmem>>, vector<32x64xf32>
    %56 = arith.truncf %54 : vector<2x32xf32> to vector<2x32xbf16>
    %57 = arith.truncf %55 : vector<32x64xf32> to vector<32x64xbf16>
    %cst_26 = arith.constant dense<0.000000e+00> : vector<2x64xf32>
    %58 = tpu.matmul %56, %57, %cst_26 {dimension_numbers = #tpu.dot_dimension_numbers<[1], [0], [0], [1], [0, 0, 1, 1], [], []>} : vector<2x32xbf16>, vector<32x64xbf16>, vector<2x64xf32> -> vector<2x64xf32>
    %c3 = arith.constant 3 : index
    %c0_27 = arith.constant 0 : index
    %59 = vector.load %arg4[%c3, %c0_27] : memref<240x128xf32, #tpu.memory_space<vmem>>, vector<1x64xf32>
    %60 = vector.broadcast %59 : vector<1x64xf32> to vector<2x64xf32>
    %61 = arith.addf %58, %60 : vector<2x64xf32>
    %cst_28 = arith.constant 0.000000e+00 : f32
    %62 = vector.broadcast %cst_28 : f32 to vector<2x64xf32>
    %63 = arith.subf %62, %61 : vector<2x64xf32>
    %64 = math.exp %63 : vector<2x64xf32>
    %cst_29 = arith.constant 1.000000e+00 : f32
    %65 = vector.broadcast %cst_29 : f32 to vector<2x64xf32>
    %66 = arith.addf %65, %64 : vector<2x64xf32>
    %67 = tpu.reciprocal %66 {approx = true} : vector<2x64xf32> -> vector<2x64xf32>
    %c144 = arith.constant 144 : index
    %c0_30 = arith.constant 0 : index
    %68 = vector.load %arg4[%c144, %c0_30] : memref<240x128xf32, #tpu.memory_space<vmem>>, vector<64x16xf32>
    %69 = arith.truncf %67 : vector<2x64xf32> to vector<2x64xbf16>
    %70 = arith.truncf %68 : vector<64x16xf32> to vector<64x16xbf16>
    %cst_31 = arith.constant dense<0.000000e+00> : vector<2x16xf32>
    %71 = tpu.matmul %69, %70, %cst_31 {dimension_numbers = #tpu.dot_dimension_numbers<[1], [0], [0], [1], [0, 0, 1, 1], [], []>} : vector<2x64xbf16>, vector<64x16xbf16>, vector<2x16xf32> -> vector<2x16xf32>
    %c4 = arith.constant 4 : index
    %c0_32 = arith.constant 0 : index
    %72 = vector.load %arg4[%c4, %c0_32] : memref<240x128xf32, #tpu.memory_space<vmem>>, vector<1x16xf32>
    %73 = vector.broadcast %72 : vector<1x16xf32> to vector<2x16xf32>
    %74 = arith.addf %71, %73 : vector<2x16xf32>
    %cst_33 = arith.constant 0.000000e+00 : f32
    %75 = vector.broadcast %cst_33 : f32 to vector<2x16xf32>
    %76 = arith.maximumf %74, %75 : vector<2x16xf32>
    %c208 = arith.constant 208 : index
    %c0_34 = arith.constant 0 : index
    %77 = vector.load %arg4[%c208, %c0_34] : memref<240x128xf32, #tpu.memory_space<vmem>>, vector<16x16xf32>
    %78 = arith.truncf %76 : vector<2x16xf32> to vector<2x16xbf16>
    %79 = arith.truncf %77 : vector<16x16xf32> to vector<16x16xbf16>
    %cst_35 = arith.constant dense<0.000000e+00> : vector<2x16xf32>
    %80 = tpu.matmul %78, %79, %cst_35 {dimension_numbers = #tpu.dot_dimension_numbers<[1], [0], [0], [1], [0, 0, 1, 1], [], []>} : vector<2x16xbf16>, vector<16x16xbf16>, vector<2x16xf32> -> vector<2x16xf32>
    %c5 = arith.constant 5 : index
    %c0_36 = arith.constant 0 : index
    %81 = vector.load %arg4[%c5, %c0_36] : memref<240x128xf32, #tpu.memory_space<vmem>>, vector<1x16xf32>
    %82 = vector.broadcast %81 : vector<1x16xf32> to vector<2x16xf32>
    %83 = arith.addf %80, %82 : vector<2x16xf32>
    %cst_37 = arith.constant 0.000000e+00 : f32
    %84 = vector.broadcast %cst_37 : f32 to vector<2x16xf32>
    %85 = arith.cmpf ogt, %83, %84 : vector<2x16xf32>
    %86 = math.exp %83 : vector<2x16xf32>
    %cst_38 = arith.constant 1.000000e+00 : f32
    %87 = vector.broadcast %cst_38 : f32 to vector<2x16xf32>
    %88 = arith.subf %86, %87 : vector<2x16xf32>
    %89 = arith.select %85, %83, %88 : vector<2x16xi1>, vector<2x16xf32>
    %c224 = arith.constant 224 : index
    %c0_39 = arith.constant 0 : index
    %90 = vector.load %arg4[%c224, %c0_39] : memref<240x128xf32, #tpu.memory_space<vmem>>, vector<16x1xf32>
    %91 = arith.truncf %89 : vector<2x16xf32> to vector<2x16xbf16>
    %92 = arith.truncf %90 : vector<16x1xf32> to vector<16x1xbf16>
    %cst_40 = arith.constant dense<0.000000e+00> : vector<2x1xf32>
    %93 = tpu.matmul %91, %92, %cst_40 {dimension_numbers = #tpu.dot_dimension_numbers<[1], [0], [0], [1], [0, 0, 1, 1], [], []>} : vector<2x16xbf16>, vector<16x1xbf16>, vector<2x1xf32> -> vector<2x1xf32>
    %c6 = arith.constant 6 : index
    %c0_41 = arith.constant 0 : index
    %94 = vector.load %arg4[%c6, %c0_41] : memref<240x128xf32, #tpu.memory_space<vmem>>, vector<1x1xf32>
    %95 = vector.broadcast %94 : vector<1x1xf32> to vector<2x1xf32>
    %96 = arith.addf %93, %95 : vector<2x1xf32>
    %c0_42 = arith.constant 0 : index
    %c0_43 = arith.constant 0 : index
    %97 = vector.load %arg5[%c0_42, %c0_43] : memref<2x1xf32, #tpu.memory_space<vmem>>, vector<2x1xf32>
    tpu.vector_store %arg5[%c0_42, %c0_43], %96 {strides = array<i32>} : memref<2x1xf32, #tpu.memory_space<vmem>>, vector<2x1xf32>,
    return
  }
}

</mosaic_0001>

<bundles_post_ra>
// kernel: tpu_custom_call.1
= control target key start
LH: loop header
LB: loop body
LE: loop exit
PB: predicated region body
PF: predicated region fallthrough
CT: control target
= control target key end

     0   :  { %10 = vsyncpa [#allocation3], 0  ;;  %s849_s18 = smov [#allocation2]   ;;  %s979_s0 = inlined_call_operand.vmem [shape: f32[16,4], index: 0, kind: input, shape index: {}]   ;;  %s980_s1 = inlined_call_operand.vmem [shape: bf16[16,16], index: 1, kind: input, shape index: {}]   ;;  %s981_s2 = inlined_call_operand.vmem [shape: f32[16,1], index: 2, kind: input, shape index: {}]   ;;  %s982_s3 = inlined_call_operand.vmem [shape: f32[2,16], index: 3, kind: input, shape index: {}]   ;;  %s983_s4 = inlined_call_operand.hbm [shape: f32[240,128], index: 4, kind: input, shape index: {}]   ;;  %s984_s5 = inlined_call_operand.vmem [shape: f32[2,1], index: 5, kind: output, shape index: {}]  }
   0x1   :  { %s24_s19 = sshll.u32 %s849_s18, 4  ;;  %s825_s22 = scalar_lea.hbm %s983_s4, 3840  ;;  %s25_s19 = int_to_ptr.vmem [resolvable:$true] %s24_s19 }
   0x2   :  { %p826_p0 = scmp.ne.s32.totalorder %s983_s4, %s825_s22  ;;  %p829_p1 = scmp.lt.u32.totalorder %s825_s22, %s983_s4 }
   0x4   :  { %p831_p2 = pnand %p829_p1, %p826_p0 }
   0x6   :  { %834 = shalt.err (!%p831_p2)
}
   0x7   :  { %s835_s27 = scalar_lea.vmem %s25_s19, 3840  ;;  %p840_p4 = scmp.lt.s32.totalorder %s25_s19, %s25_s19 }
   0x8   :  { %p836_p3 = scmp.ne.s32.totalorder %s25_s19, %s835_s27  ;;  %p841_p5 = scmp.lt.s32.totalorder %s835_s27, %s835_s27 }
   0xa   :  { %p842_p6 = por %p841_p5, %p840_p4 }
   0xc   :  { %p843_p7 = pnand %p842_p6, %p836_p3 }
   0xe   :  { %846 = shalt.err (!%p843_p7)
}
   0xf   :  { %s850_s28 = smov 128   ;;  %s851_s29 = smov 8  }
  0x10   :  { %30 = dma.hbm_to_vmem [thread:$0]  %s983_s4, 3840, %s25_s19, [#allocation3], %s850_s28, %s850_s28, %s851_s29  }
  0x11   :  { %847 = dma.done.wait [#allocation3], 3840  }
  0x12   :  { %848 = vsyncadd [#allocation3], 4294963456  ;;  %v852_v0 = vmov 0.0   ;;  %vm853_vm0 = vmmov 0   ;;  %v854_v1 = vmov 0   ;;  %vm49_vm1 = vcmask 1041408  }
  0x13   :  { %723 = vmatprep.subr.bf16.mxu0 %v852_v0  ;;  %725 = vmatprep.mubr.msk.bf16.mxu0 %vm853_vm0, %v852_v0  ;;  %v42_v2 = vld [vmem:[#allocation2 + $0x8] sm:$0xf]  ;;  %v35_v3 = vld [vmem:[%s979_s0] sm:$0xff]  ;;  %v36_v4 = vld [vmem:[%s979_s0 + $0x8] sm:$0xff]  ;;  %vm45_vm2 = vcmask 31744   ;;  %vm112_vm3 = vcmask 130048  }
  0x14   :  { %809 = vset.pattern.permute.xlu0 %v854_v1  ;;  %729 = vmatprep.subr.bf16.mxu1 %v852_v0  ;;  %v44_v5 = vpack.c.bf16 %v42_v2, %v42_v2  ;;  %v39_v6 = vld [vmem:[%s981_s2] sm:$0xff]  ;;  %v43_v8 = vpack.c.bf16 %v36_v4, %v35_v3  ;;  %v40_v9 = vld [vmem:[%s981_s2 + $0x8] sm:$0xff]  ;;  %v178_v22 = vld [vmem:[#allocation2 + $0x20] sm:$0xff]  ;;  %vm183_vm4 = vcmask 261120   ;;  %vm513_vm5 = vcmask 523264  }
  0x15   :  { %731 = vmatprep.mubr.msk.bf16.mxu1 %vm853_vm0, %v852_v0  ;;  %96 = vperm.xlu0 %809, %v39_v6   ;;  %v810_v19 = vld [vmem:[%s980_s1] sm:$0xff]   ;;  %v177_v21 = vld [vmem:[#allocation2 + $0x18] sm:$0xff]  ;;  %v179_v24 = vld [vmem:[#allocation2 + $0x28] sm:$0xff]  ;;  %vm667_vm7 = vcmask 1024  }
  0x16   :  { %v51_v7 = vsel %vm49_vm1, %v44_v5, 0  ;;  %v176_v20 = vld [vmem:[#allocation2 + $0x10] sm:$0xff]  ;;  %v182_v25 = vpack.c.bf16 %v179_v24, %v178_v22  ;;  %v677_v27 = vld [vmem:[#allocation2] ss:$0 sm:$0xff]  ;;  %v284_v53 = vld [vmem:[#allocation2 + $0x38] sm:$0xff] }
  0x17   :  { %724 = vmatpush3.bf16.msra.mxu0 %v51_v7  ;;  %v181_v23 = vpack.c.bf16 %v177_v21, %v176_v20  ;;  %v283_v52 = vld [vmem:[#allocation2 + $0x30] sm:$0xff]  ;;  %v285_v56 = vld [vmem:[#allocation2 + $0x40] sm:$0xff]  ;;  %v286_v57 = vld [vmem:[#allocation2 + $0x48] sm:$0xff] }
  0x18   :  { %735 = vmatprep.subr.bf16.mxu0 %v852_v0  ;;  %v291_v55 = vpack.c.bf16 %v284_v53, %v283_v52  ;;  %v292_v58 = vpack.c.bf16 %v286_v57, %v285_v56  ;;  %v287_v59 = vld [vmem:[#allocation2 + $0x50] sm:$0xff]  ;;  %v288_v60 = vld [vmem:[#allocation2 + $0x58] sm:$0xff]  ;;  %v289_v62 = vld [vmem:[#allocation2 + $0x60] sm:$0xff] }
  0x19   :  { %101 = vperm.xlu0 %809, %v40_v9   ;;  %v294_v61 = vpack.c.bf16 %v288_v60, %v287_v59  ;;  %v290_v63 = vld [vmem:[#allocation2 + $0x68] sm:$0xff]  ;;  %v680_v3 = vld [vmem:[#allocation2 + $0x1] ss:$0 sm:$0xff]  ;;  %v436_v20 = vld [vmem:[#allocation2 + $0x78] sm:$0xff] }
  0x1a   :  { %726 = vmatmul.mubr.msk.bf16.vlgmr.msra.gmra.mrb[0].mxu0 %vm45_vm2, %v43_v8  ;;  %v295_v1 = vpack.c.bf16 %v290_v63, %v289_v62  ;;  %v683_v22 = vld [vmem:[#allocation2 + $0x2] ss:$0 sm:$0xff]  ;;  %v502_v53 = vld [vmem:[#allocation2 + $0xc8] sm:$0xff] }
  0x1b   :  { %739 = vmatprep.mubr.msk.bf16.mxu0 %vm853_vm0, %v852_v0  ;;  %736 = vmatpush3.bf16.msra.mxu0 %v181_v23  ;;  %v501_v52 = vld [vmem:[#allocation2 + $0xc0] sm:$0xff] }
  0x1c   :  { %737 = vmatprep.subr.bf16.mxu0 %v852_v0 }
  0x1f   :  { %738 = vmatpush3.bf16.msra.mxu0 %v182_v25 }
  0x20   :  { %749 = vmatprep.subr.bf16.mxu0 %v852_v0 }
  0x94   :  { %v918_v10 = vpop.permute.xlu0 %96 }
  0x98   :  { %v920_v13 = vpop.permute.xlu0 %101 }
  0xed   :  { %v87_v11 = vpop.f32.mrb[0].mxu0 }
  0xee   :  { %v727_v12 = vpop.f32.mrb[1].mxu0  ;;  %v104_v15 = vmul.f32 %v918_v10, %v87_v11 }
  0xef   :  { %v90_v14 = vpop.f32.mrb[2].mxu0 }
  0xf0   :  { %v105_v16 = vmul.f32 %v920_v13, %v90_v14  ;;  %v728_v17 = vpop.f32.mrb[3].mxu0 }
  0xf2   :  { %v106_v18 = vpack.c.bf16 %v105_v16, %v104_v15 }
  0xf4   :  { %730 = vmatpush3.bf16.msra.mxu1 %v106_v18 }
  0xf5   :  { %743 = vmatprep.subr.bf16.mxu1 %v852_v0 }
  0xf7   :  { %732 = vmatmul.mubr.msk.bf16.vlgmr.msra.gmra.mrb[0].mxu1 %vm112_vm3, %v810_v19 }
  0xf8   :  { %745 = vmatprep.mubr.msk.bf16.mxu1 %vm853_vm0, %v852_v0 }
 0x1ca   :  { %v150_v26 = vpop.f32.mrb[0].mxu1 }
 0x1cb   :  { %v157_v28 = vmul.f32 %v150_v26, %v918_v10  ;;  %v733_v29 = vpop.f32.mrb[1].mxu1 }
 0x1cc   :  { %v153_v30 = vpop.f32.mrb[2].mxu1 }
 0x1cd   :  { %v164_v31 = vadd.f32 %v677_v27, %v157_v28  ;;  %v158_v32 = vmul.f32 %v153_v30, %v920_v13  ;;  %v734_v33 = vpop.f32.mrb[3].mxu1 }
 0x1cf   :  { %v166_v34 = vsub.f32 0.0, %v164_v31  ;;  %v165_v35 = vadd.f32 %v677_v27, %v158_v32  ;;  %v41_v32 = vld [vmem:[%s982_s3] sm:$0x3] }
 0x1d1   :  { %v168_v36 = vmul.f32 1.442695, %v166_v34  ;;  %v167_v37 = vsub.f32 0.0, %v165_v35  ;;  %v390_v34 = vpack.c.bf16 %v41_v32, %v41_v32  ;;  %v437_v35 = vld [vmem:[#allocation2 + $0x80] sm:$0xff] }
 0x1d3   :  { %811 = vpow2.f32 %v168_v36  ;;  %v170_v38 = vmul.f32 1.442695, %v167_v37  ;;  %v438_v36 = vld [vmem:[#allocation2 + $0x88] sm:$0xff] }
 0x1d4   :  { %v441_v37 = vpack.c.bf16 %v438_v36, %v437_v35 }
 0x1d5   :  { %813 = vpow2.f32 %v170_v38 }
 0x1dd   :  { %v812_v39 = vpop.eup %811 }
 0x1de   :  { %v172_v40 = vadd.f32 1.0, %v812_v39 }
 0x1df   :  { %v814_v41 = vpop.eup %813 }
 0x1e0   :  { %v173_v42 = vadd.f32 1.0, %v814_v41  ;;  %815 = vrcp.f32 %v172_v40 }
 0x1e2   :  { %817 = vrcp.f32 %v173_v42 }
 0x1ea   :  { %v816_v43 = vpop.eup %815 }
 0x1ec   :  { %v818_v44 = vpop.eup %817 }
 0x1ed   :  { %v180_v45 = vpack.c.bf16 %v818_v44, %v816_v43  ;;  %v495_v43 = vld [vmem:[#allocation2 + $0x90] sm:$0xff]  ;;  %v496_v44 = vld [vmem:[#allocation2 + $0x98] sm:$0xff] }
 0x1ef   :  { %740 = vmatmul.mubr.msk.bf16.vlgmr.msra.gmra.mrb[4].mxu0 %vm183_vm4, %v180_v45 }
 0x1f0   :  { %753 = vmatprep.mubr.msk.bf16.mxu0 %vm853_vm0, %v852_v0  ;;  %750 = vmatpush3.bf16.msra.mxu0 %v294_v61 }
 0x1f1   :  { %751 = vmatprep.subr.bf16.mxu0 %v852_v0 }
 0x1f4   :  { %752 = vmatpush3.bf16.msra.mxu0 %v295_v1 }
 0x1f5   :  { %765 = vmatprep.subr.bf16.mxu0 %v852_v0 }
 0x2c2   :  { %v221_v46 = vpop.f32.mrb[4].mxu0 }
 0x2c3   :  { %v741_v47 = vpop.f32.mrb[5].mxu0  ;;  %v228_v49 = vmul.f32 %v221_v46, %v918_v10  ;;  %v497_v46 = vld [vmem:[#allocation2 + $0xa0] sm:$0xff] }
 0x2c4   :  { %v224_v48 = vpop.f32.mrb[6].mxu0  ;;  %v498_v47 = vld [vmem:[#allocation2 + $0xa8] sm:$0xff] }
 0x2c5   :  { %v229_v50 = vmul.f32 %v224_v48, %v920_v13  ;;  %v742_v51 = vpop.f32.mrb[7].mxu0  ;;  %v505_v48 = vpack.c.bf16 %v498_v47, %v497_v46 }
 0x2c7   :  { %v230_v54 = vpack.c.bf16 %v229_v50, %v228_v49  ;;  %v499_v49 = vld [vmem:[#allocation2 + $0xb0] sm:$0xff]  ;;  %v500_v50 = vld [vmem:[#allocation2 + $0xb8] sm:$0xff] }
 0x2c8   :  { %v506_v51 = vpack.c.bf16 %v500_v50, %v499_v49 }
 0x2c9   :  { %744 = vmatpush3.bf16.msra.mxu1 %v230_v54  ;;  %v507_v54 = vpack.c.bf16 %v502_v53, %v501_v52 }
 0x2ca   :  { %757 = vmatprep.subr.bf16.mxu1 %v852_v0 }
 0x2cc   :  { %746 = vmatmul.mubr.msk.bf16.vlgmr.msra.gmra.mrb[4].mxu1 %vm112_vm3, %v810_v19 }
 0x2cd   :  { %758 = vmatpush3.bf16.msra.mxu1 %v291_v55  ;;  %761 = vmatprep.mubr.msk.bf16.mxu1 %vm853_vm0, %v852_v0  ;;  %v685_v55 = vld [vmem:[#allocation2 + $0x3] ss:$0 sm:$0xff] }
 0x2ce   :  { %759 = vmatprep.subr.bf16.mxu1 %v852_v0 }
 0x2d1   :  { %760 = vmatpush3.bf16.msra.mxu1 %v292_v58 }
 0x2d2   :  { %771 = vmatprep.subr.bf16.mxu1 %v852_v0 }
 0x2d4   :  { %762 = vmatmul.mubr.msk.bf16.vlgmr.msra.gmra.mrb[8].mxu1 %vm183_vm4, %v180_v45  ;;  %v504_v45 = vpack.c.bf16 %v496_v44, %v495_v43 }
 0x2d5   :  { %775 = vmatprep.mubr.msk.bf16.mxu1 %vm853_vm0, %v852_v0 }
 0x39f   :  { %v265_v2 = vpop.f32.mrb[4].mxu1 }
 0x3a0   :  { %v272_v4 = vmul.f32 %v265_v2, %v918_v10  ;;  %v747_v5 = vpop.f32.mrb[5].mxu1  ;;  %v435_v10 = vld [vmem:[#allocation2 + $0x70] sm:$0xff] }
 0x3a1   :  { %v268_v6 = vpop.f32.mrb[6].mxu1  ;;  %v440_v21 = vpack.c.bf16 %v436_v20, %v435_v10  ;;  %v559_v5 = vld [vmem:[#allocation2 + $0xd8] sm:$0xff]  ;;  %v689_v10 = vld [vmem:[#allocation2 + $0x5] ss:$0 sm:$0xff] }
 0x3a2   :  { %v279_v7 = vadd.f32 %v680_v3, %v272_v4  ;;  %v273_v8 = vmul.f32 %v268_v6, %v920_v13  ;;  %v748_v9 = vpop.f32.mrb[7].mxu1  ;;  %v558_v4 = vld [vmem:[#allocation2 + $0xd0] sm:$0xff] }
 0x3a3   :  { %772 = vmatpush3.bf16.msra.mxu1 %v440_v21  ;;  %v561_v6 = vpack.c.bf16 %v559_v5, %v558_v4 }
 0x3a4   :  { %v280_v11 = vadd.f32 %v680_v3, %v273_v8  ;;  %v281_v12 = vmax.f32 %v279_v7, 0.0  ;;  %773 = vmatprep.subr.bf16.mxu1 %v852_v0  ;;  %v687_v7 = vld [vmem:[#allocation2 + $0x4] ss:$0 sm:$0xff] }
 0x3a6   :  { %v282_v14 = vmax.f32 %v280_v11, 0.0 }
 0x3a7   :  { %v374_v15 = vpop.f32.mrb[8].mxu1  ;;  %774 = vmatpush3.bf16.msra.mxu1 %v441_v37 }
 0x3a8   :  { %v293_v16 = vpack.c.bf16 %v282_v14, %v281_v12  ;;  %v763_v17 = vpop.f32.mrb[9].mxu1  ;;  %791 = vmatprep.subr.bf16.mxu1 %v852_v0 }
 0x3a9   :  { %v377_v18 = vpop.f32.mrb[10].mxu1  ;;  %v615_v17 = vld [vmem:[#allocation2 + $0xe0] sm:$0xff] }
 0x3aa   :  { %754 = vmatmul.mubr.msk.bf16.vlgmr.msra.gmra.mrb[8].mxu0 %vm183_vm4, %v293_v16  ;;  %v764_v19 = vpop.f32.mrb[11].mxu1 }
 0x3ab   :  { %767 = vmatprep.mubr.msk.bf16.mxu0 %vm853_vm0, %v852_v0 }
 0x47d   :  { %v333_v13 = vpop.f32.mrb[8].mxu0 }
 0x47e   :  { %v375_v23 = vadd.f32 %v374_v15, %v333_v13  ;;  %v755_v24 = vpop.f32.mrb[9].mxu0 }
 0x47f   :  { %v336_v25 = vpop.f32.mrb[10].mxu0 }
 0x480   :  { %v386_v26 = vadd.f32 %v683_v22, %v375_v23  ;;  %v378_v27 = vadd.f32 %v377_v18, %v336_v25  ;;  %v756_v28 = vpop.f32.mrb[11].mxu0  ;;  %v616_v18 = vld [vmem:[#allocation2 + $0xe8] sm:$0xff] }
 0x481   :  { %v618_v19 = vpack.c.bf16 %v616_v18, %v615_v17 }
 0x482   :  { %v387_v29 = vadd.f32 %v683_v22, %v378_v27  ;;  %v388_v30 = vmax.f32 %v386_v26, 0.0 }
 0x484   :  { %v389_v31 = vmax.f32 %v387_v29, 0.0 }
 0x486   :  { %v391_v33 = vpack.c.bf16 %v389_v31, %v388_v30 }
 0x488   :  { %766 = vmatpush3.bf16.msra.mxu0 %v391_v33 }
 0x489   :  { %779 = vmatprep.subr.bf16.mxu0 %v852_v0 }
 0x48b   :  { %768 = vmatmul.mubr.msk.bf16.vlgmr.msra.gmra.mrb[12].mxu0 %vm112_vm3, %v390_v34 }
 0x48c   :  { %787 = vmatprep.mubr.msk.bf16.mxu0 %vm853_vm0, %v852_v0  ;;  %780 = vmatpush3.bf16.msra.mxu0 %v504_v45 }
 0x48d   :  { %781 = vmatprep.subr.bf16.mxu0 %v852_v0 }
 0x490   :  { %782 = vmatpush3.bf16.msra.mxu0 %v505_v48 }
 0x491   :  { %783 = vmatprep.subr.bf16.mxu0 %v852_v0 }
 0x494   :  { %784 = vmatpush3.bf16.msra.mxu0 %v506_v51 }
 0x495   :  { %785 = vmatprep.subr.bf16.mxu0 %v852_v0 }
 0x498   :  { %786 = vmatpush3.bf16.msra.mxu0 %v507_v54 }
 0x55e   :  { %v429_v38 = vpop.f32.mrb[12].mxu0 }
 0x55f   :  { %v439_v39 = vpack.c.bf16 %v429_v38, %v429_v38  ;;  %v769_v40 = vpop.f32.mrb[13].mxu0 }
 0x560   :  { %v432_v41 = vpop.f32.mrb[14].mxu0 }
 0x561   :  { %776 = vmatmul.mubr.msk.bf16.vlgmr.msra.gmra.mrb[12].mxu1 %vm183_vm4, %v439_v39  ;;  %v770_v42 = vpop.f32.mrb[15].mxu0 }
 0x562   :  { %793 = vmatprep.mubr.msk.bf16.mxu1 %vm853_vm0, %v852_v0  ;;  %792 = vmatpush3.bf16.msra.mxu1 %v561_v6 }
 0x563   :  { %797 = vmatprep.subr.bf16.mxu1 %v852_v0 }
 0x634   :  { %v484_v56 = vpop.f32.mrb[12].mxu1 }
 0x635   :  { %v485_v57 = vadd.f32 %v685_v55, %v484_v56  ;;  %v777_v58 = vpop.f32.mrb[13].mxu1 }
 0x636   :  { %v487_v59 = vpop.f32.mrb[14].mxu1 }
 0x637   :  { %v490_v60 = vsub.f32 0.0, %v485_v57  ;;  %v778_v61 = vpop.f32.mrb[15].mxu1 }
 0x639   :  { %v491_v62 = vmul.f32 1.442695, %v490_v60 }
 0x63b   :  { %819 = vpow2.f32 %v491_v62 }
 0x645   :  { %v820_v63 = vpop.eup %819 }
 0x646   :  { %v493_v1 = vadd.f32 1.0, %v820_v63 }
 0x648   :  { %821 = vrcp.f32 %v493_v1 }
 0x652   :  { %v822_v2 = vpop.eup %821 }
 0x653   :  { %v503_v3 = vpack.c.bf16 %v822_v2, %v822_v2 }
 0x655   :  { %788 = vmatmul.mubr.msk.bf16.vlgmr.msra.gmra.mrb[16].mxu0 %vm513_vm5, %v503_v3 }
 0x728   :  { %v551_v8 = vpop.f32.mrb[16].mxu0 }
 0x729   :  { %v552_v9 = vadd.f32 %v687_v7, %v551_v8  ;;  %v789_v11 = vpop.f32.mrb[17].mxu0 }
 0x72a   :  { %v554_v12 = vpop.f32.mrb[18].mxu0 }
 0x72b   :  { %v557_v14 = vmax.f32 %v552_v9, 0.0  ;;  %v790_v15 = vpop.f32.mrb[19].mxu0 }
 0x72d   :  { %v560_v16 = vpack.c.bf16 %v557_v14, %v557_v14 }
 0x72f   :  { %794 = vmatmul.mubr.msk.bf16.vlgmr.msra.gmra.mrb[16].mxu1 %vm112_vm3, %v560_v16 }
 0x730   :  { %799 = vmatprep.mubr.msk.bf16.mxu1 %vm853_vm0, %v852_v0  ;;  %798 = vmatpush3.bf16.msra.mxu1 %v618_v19  ;;  %v692_v0 = vld [vmem:[#allocation2 + $0x6] ss:$0 sm:$0xff] }
 0x802   :  { %v604_v20 = vpop.f32.mrb[16].mxu1 }
 0x803   :  { %v605_v21 = vadd.f32 %v689_v10, %v604_v20  ;;  %v795_v13 = vpop.f32.mrb[17].mxu1 }
 0x804   :  { %v607_v22 = vpop.f32.mrb[18].mxu1 }
 0x805   :  { %v611_v23 = vmul.f32 1.442695, %v605_v21  ;;  %v796_v24 = vpop.f32.mrb[19].mxu1  ;;  %vm610_vm6 = vcmp.gt.f32.partialorder %v605_v21, 0.0 }
 0x807   :  { %823 = vpow2.f32 %v611_v23 }
 0x811   :  { %v824_v25 = vpop.eup %823 }
 0x812   :  { %v691_v26 = vadd.f32 -1.0, %v824_v25 }
 0x814   :  { %v614_v27 = vsel %vm610_vm6, %v605_v21, %v691_v26 }
 0x815   :  { %v617_v28 = vpack.c.bf16 %v614_v27, %v614_v27 }
 0x817   :  { %800 = vmatmul.mubr.msk.bf16.vlgmr.msra.gmra.mrb[20].mxu1 %vm112_vm3, %v617_v28 }
 0x8ea   :  { %v661_v29 = vpop.f32.mrb[20].mxu1 }
 0x8eb   :  { %v662_v30 = vadd.f32 %v692_v0, %v661_v29  ;;  %v801_v31 = vpop.f32.mrb[21].mxu1 }
 0x8ec   :  { %v664_v32 = vpop.f32.mrb[22].mxu1 }
 0x8ed   :  { %668 = vst.msk [vmem:[%s984_s5] sm:$0x3] %vm667_vm7, %v662_v30  ;;  %v802_v33 = vpop.f32.mrb[23].mxu1 }
 0x8ee   :  { %673 = vsyncpa [#allocation3], 1 }

</bundles_post_ra>
